<compile_context>
chip_gen: v7x
topology: tpu7x:2x2x1
jax: 0.10.0
libtpu: 0.0.40
codegen_flags: <defaults>
</compile_context>

<pallas_src>
import functools

import jax
import jax.numpy as jnp
from jax import lax
from jax.experimental import pallas as pl
from jax.experimental.pallas import tpu as pltpu


def _round_up(x: int, m: int) -> int:
    return ((x + m - 1) // m) * m


def _round_down(x: int, m: int) -> int:
    return (x // m) * m


def _vmem_limit_bytes() -> int:
    """Scoped-VMEM budget to request: ~75% of physical, capped at 96 MiB."""
    cap = None
    try:
        cap = getattr(pltpu.get_tpu_info(), "vmem_capacity_bytes", None)
    except Exception:
        cap = None
    if not cap:
        cap = 64 << 20  # conservative fallback (v7x per-TC VMEM)
    return int(max(32 << 20, min(int(cap) * 3 // 4, 96 << 20)))


def _gram_kernel(x_ref, g_ref, *, inv_k, kps, tk, hw, needs_mask):
    # x_ref: (1, C_pad, TK)     feature tile (native/compute dtype)
    # g_ref: (1, C_pad, C_pad)  f32 output block, resident across the K axis
    s = pl.program_id(1)
    k = pl.program_id(2)

    @pl.when(k == 0)
    def _():
        g_ref[0] = jnp.zeros_like(g_ref[0])

    f = x_ref[0]  # (C_pad, TK)
    if needs_mask:
        # Logical (unclamped) element offset of this tile along HW; lanes past
        # the true HW extent (tail tile / fully-OOB split tile) contribute 0.
        start = (s * kps + k) * tk
        lane = lax.broadcasted_iota(jnp.int32, f.shape, 1)
        f = jnp.where(start + lane < hw, f, jnp.zeros_like(f))

    # F @ F^T without materializing a transpose: NT matmul contracting the
    # lane (TK) axis of both operands on the MXU, accumulating in f32 directly
    # into the resident output block (no scratch accumulator).
    g_ref[0] += lax.dot_general(
        f, f,
        dimension_numbers=(((1,), (1,)), ((), ())),
        preferred_element_type=jnp.float32,
    )

    @pl.when(k == kps - 1)
    def _():
        # Fold the 1/(C*H*W) normalization into one scalar multiply at the end.
        g_ref[0] = g_ref[0] * jnp.float32(inv_k)


def gram_matrix_pallas(x, *, compute_dtype=None, tk_cap=None):
    """x: (N, C, H, W) -> per-batch gram (N, C, C) f32, normalized by C*H*W."""
    N, C, H, W = x.shape
    HW = H * W
    inv_k = 1.0 / float(C * HW)  # torch: divide by b*c*d (unpadded dims)

    kdtype = jnp.dtype(compute_dtype) if compute_dtype is not None else x.dtype
    itemsize = jnp.dtype(kdtype).itemsize
    sublane = max(8, 32 // itemsize)  # 8 f32 / 16 bf16 / 32 int8

    x_flat = x.reshape(N, C, HW)
    if x_flat.dtype != kdtype:
        x_flat = x_flat.astype(kdtype)

    # Pad channels to the dtype's sublane multiple (no-op for 64/128/256/512).
    C_pad = _round_up(C, sublane)
    if C_pad != C:
        x_flat = jnp.pad(x_flat, ((0, 0), (0, C_pad - C), (0, 0)))

    # K-tile sizing: ~2-8 MiB per (double-buffered) input block, bounded by the
    # per-generation scoped-VMEM budget.  Kernel is HBM-bound for C <= 512, so
    # bigger K tiles amortize the ~0.35 us fixed per-step pipeline overhead.
    vmem_limit = _vmem_limit_bytes()
    out_block_bytes = 2 * C_pad * C_pad * 4  # double-buffered f32 output block
    tile_target = max(1 << 20, min(8 << 20, (vmem_limit - out_block_bytes) // 4))
    tk_budget = max(128, _round_down(tile_target // (C_pad * itemsize), 128))
    if tk_cap is not None:
        tk_budget = max(128, min(tk_budget, _round_down(int(tk_cap), 128)))

    if HW <= tk_budget:
        TK = HW  # full-extent block (allowed: block dim == array dim), no mask
    else:
        # Prefer a 128-multiple that divides HW exactly -> no tail masking.
        TK = 0
        t = tk_budget
        while t >= 128:
            if HW % t == 0:
                TK = t
                break
            t -= 128
        if TK < max(128, tk_budget // 2):
            TK = tk_budget  # give up on an exact divisor; mask the tail tile

    k_total = -(-HW // TK)  # number of real K blocks

    # Split-K so both v7x TensorCores have parallel work when N == 1
    # (harmless on single-TC v5e/v6e).
    S = 2 if (N == 1 and k_total >= 2) else 1
    kps = -(-k_total // S)
    needs_mask = (S * kps * TK != HW)
    last_blk = k_total - 1

    kernel = functools.partial(_gram_kernel, inv_k=inv_k, kps=kps, tk=TK,
                               hw=HW, needs_mask=needs_mask)

    grid_spec = pltpu.PrefetchScalarGridSpec(
        num_scalar_prefetch=0,
        grid=(N, S, kps),
        in_specs=[pl.BlockSpec(
            (1, C_pad, TK),
            # Clamp fully-OOB split tiles onto the last real block; their
            # contribution is zeroed by the in-kernel mask.
            lambda b, s, k: (b, 0, jnp.minimum(s * kps + k, last_blk)))],
        out_specs=pl.BlockSpec(
            (1, C_pad, C_pad), lambda b, s, k: (b * S + s, 0, 0)),
    )

    cost = pl.CostEstimate(
        flops=2 * N * C * C * HW,
        bytes_accessed=N * C * HW * itemsize + N * S * C_pad * C_pad * 4,
        transcendentals=0,
    )

    G_parts = pl.pallas_call(
        kernel,
        out_shape=jax.ShapeDtypeStruct((N * S, C_pad, C_pad), jnp.float32),
        grid_spec=grid_spec,
        compiler_params=pltpu.CompilerParams(
            # Batch & split axes carry no cross-step state -> parallel
            # (megacore on v7x); the HW contraction axis carries the resident
            # output accumulator -> arbitrary.
            dimension_semantics=("parallel", "parallel", "arbitrary"),
            vmem_limit_bytes=vmem_limit,
        ),
        cost_estimate=cost,
    )(x_flat)

    # Tiny (N, S, C_pad, C_pad) -> (N, C, C) reduction in plain JAX.
    return G_parts.reshape(N, S, C_pad, C_pad).sum(axis=1)[:, :C, :C]


def gram_matrix_ref(x):
    """Plain-JAX reference of the torch gram_matrix (for checking)."""
    a, b, c, d = x.shape
    f = x.reshape(a, b, c * d).astype(jnp.float32)
    return jnp.einsum("bik,bjk->bij", f, f) / (b * c * d)


class StyleLossPallas:
    """JAX/Pallas counterpart of the torch StyleLoss module."""

    def __init__(self, target_feature, *, compute_dtype=None):
        self.compute_dtype = compute_dtype
        # Target gram computed once at init with the same Pallas kernel.
        self.target = gram_matrix_pallas(target_feature,
                                         compute_dtype=compute_dtype)

    def __call__(self, x):
        G = gram_matrix_pallas(x, compute_dtype=self.compute_dtype)
        # Tiny (N, C, C) MSE — done in plain JAX so the kernel's batch axis
        # stays parallel (torch F.mse_loss "mean" reduction).
        self.loss = jnp.mean((G - self.target) ** 2)
        return x  # forward returns the input unchanged, like the torch module


if __name__ == "__main__":
    key = jax.random.PRNGKey(0)
    k_in, k_tgt, k_a, k_b = jax.random.split(key, 4)

    # --- Main module check (torch semantics, f32, single full-HW tile) ---
    N, C, H, W = 2, 4, 16, 16
    target_feature = jax.random.normal(k_tgt, (N, C, H, W), dtype=jnp.float32)
    x = jax.random.normal(k_in, (N, C, H, W), dtype=jnp.float32)

    module = StyleLossPallas(target_feature)
    out = module(x)
    loss = module.loss
    jax.block_until_ready((out, loss))

    G_ref = gram_matrix_ref(x)
    target_ref = gram_matrix_ref(target_feature)
    loss_ref = jnp.mean((G_ref - target_ref) ** 2)
    G_pallas = gram_matrix_pallas(x)
    assert jnp.allclose(out, x)
    assert jnp.allclose(G_pallas, G_ref, rtol=1e-5, atol=1e-6)
    assert jnp.allclose(loss, loss_ref, rtol=1e-5, atol=1e-6)

    # --- Tail-masking + split-K path (N=1, HW not a multiple of TK) ---
    xa = jax.random.normal(k_a, (1, 4, 16, 13), dtype=jnp.float32)
    Ga = gram_matrix_pallas(xa, tk_cap=128)
    assert jnp.allclose(Ga, gram_matrix_ref(xa), rtol=1e-5, atol=1e-6)

    # --- Split-K with an odd number of K tiles (exercises index clamping) ---
    xb = jax.random.normal(k_b, (1, 4, 15, 20), dtype=jnp.float32)
    Gb = gram_matrix_pallas(xb, tk_cap=128)
    assert jnp.allclose(Gb, gram_matrix_ref(xb), rtol=1e-5, atol=1e-6)

    # --- Optional bf16 HBM->MXU path (f32 accumulation), looser tolerance ---
    Gbf = gram_matrix_pallas(x, compute_dtype=jnp.bfloat16)
    assert jnp.allclose(Gbf, G_ref, rtol=2e-2, atol=2e-2)

    print("KERNEL_OK")
</pallas_src>

<mosaic_0001>
module attributes {stable_mosaic.version = 11 : i64} {
  func.func @_gram_kernel(%arg0: i32, %arg1: i32, %arg2: i32, %arg3: memref<1x8x256xf32, #tpu.memory_space<vmem>>, %arg4: memref<1x8x8xf32, #tpu.memory_space<vmem>>) attributes {dimension_semantics = [#tpu.dimension_semantics<parallel>, #tpu.dimension_semantics<parallel>, #tpu.dimension_semantics<arbitrary>], iteration_bounds = array<i64: 2, 1, 1>, scalar_prefetch = 0 : i64, scratch_operands = 0 : i64, tpu.core_type = #tpu.core_type<tc>, window_params = [{transform_indices = @transform_0, window_bounds = array<i64: 1, 8, 256>}, {transform_indices = @transform_1, window_bounds = array<i64: 1, 8, 8>}]} {
    %c0_i32 = arith.constant 0 : i32
    %0 = arith.cmpi eq, %arg2, %c0_i32 : i32
    %1 = arith.extui %0 : i1 to i32
    %c0_i32_0 = arith.constant 0 : i32
    %2 = arith.cmpi ne, %1, %c0_i32_0 : i32
    scf.if %2 {
      %cst_11 = arith.constant 0.000000e+00 : f32
      %15 = vector.broadcast %cst_11 : f32 to vector<8x8xf32>
      %c0_12 = arith.constant 0 : index
      %c0_13 = arith.constant 0 : index
      %c0_14 = arith.constant 0 : index
      %16 = vector.load %arg4[%c0_12, %c0_13, %c0_14] : memref<1x8x8xf32, #tpu.memory_space<vmem>>, vector<1x8x8xf32>
      %17 = vector.shape_cast %16 : vector<1x8x8xf32> to vector<8x8xf32>
      %18 = vector.shape_cast %15 : vector<8x8xf32> to vector<1x8x8xf32>
      tpu.vector_store %arg4[%c0_12, %c0_13, %c0_14], %18 {strides = array<i32>} : memref<1x8x8xf32, #tpu.memory_space<vmem>>, vector<1x8x8xf32>,
    } else {
    }
    %c0 = arith.constant 0 : index
    %c0_1 = arith.constant 0 : index
    %c0_2 = arith.constant 0 : index
    %3 = vector.load %arg3[%c0, %c0_1, %c0_2] : memref<1x8x256xf32, #tpu.memory_space<vmem>>, vector<1x8x256xf32>
    %4 = vector.shape_cast %3 : vector<1x8x256xf32> to vector<8x256xf32>
    %c0_3 = arith.constant 0 : index
    %c0_4 = arith.constant 0 : index
    %c0_5 = arith.constant 0 : index
    %5 = vector.load %arg4[%c0_3, %c0_4, %c0_5] : memref<1x8x8xf32, #tpu.memory_space<vmem>>, vector<1x8x8xf32>
    %6 = vector.shape_cast %5 : vector<1x8x8xf32> to vector<8x8xf32>
    %cst = arith.constant dense<0.000000e+00> : vector<8x8xf32>
    %7 = tpu.matmul %4, %4, %cst {dimension_numbers = #tpu.dot_dimension_numbers<[1], [1], [0], [0], [0, 0, 1, 0], [], []>} : vector<8x256xf32>, vector<8x256xf32>, vector<8x8xf32> -> vector<8x8xf32>
    %8 = arith.addf %6, %7 : vector<8x8xf32>
    %c0_6 = arith.constant 0 : index
    %c0_7 = arith.constant 0 : index
    %c0_8 = arith.constant 0 : index
    %9 = vector.load %arg4[%c0_6, %c0_7, %c0_8] : memref<1x8x8xf32, #tpu.memory_space<vmem>>, vector<1x8x8xf32>
    %10 = vector.shape_cast %9 : vector<1x8x8xf32> to vector<8x8xf32>
    %11 = vector.shape_cast %8 : vector<8x8xf32> to vector<1x8x8xf32>
    tpu.vector_store %arg4[%c0_6, %c0_7, %c0_8], %11 {strides = array<i32>} : memref<1x8x8xf32, #tpu.memory_space<vmem>>, vector<1x8x8xf32>,
    %c0_i32_9 = arith.constant 0 : i32
    %12 = arith.cmpi eq, %arg2, %c0_i32_9 : i32
    %13 = arith.extui %12 : i1 to i32
    %c0_i32_10 = arith.constant 0 : i32
    %14 = arith.cmpi ne, %13, %c0_i32_10 : i32
    scf.if %14 {
      %c0_11 = arith.constant 0 : index
      %c0_12 = arith.constant 0 : index
      %c0_13 = arith.constant 0 : index
      %15 = vector.load %arg4[%c0_11, %c0_12, %c0_13] : memref<1x8x8xf32, #tpu.memory_space<vmem>>, vector<1x8x8xf32>
      %16 = vector.shape_cast %15 : vector<1x8x8xf32> to vector<8x8xf32>
      %cst_14 = arith.constant 9.765625E-4 : f32
      %17 = vector.broadcast %cst_14 : f32 to vector<8x8xf32>
      %18 = arith.mulf %16, %17 : vector<8x8xf32>
      %c0_15 = arith.constant 0 : index
      %c0_16 = arith.constant 0 : index
      %c0_17 = arith.constant 0 : index
      %19 = vector.load %arg4[%c0_15, %c0_16, %c0_17] : memref<1x8x8xf32, #tpu.memory_space<vmem>>, vector<1x8x8xf32>
      %20 = vector.shape_cast %19 : vector<1x8x8xf32> to vector<8x8xf32>
      %21 = vector.shape_cast %18 : vector<8x8xf32> to vector<1x8x8xf32>
      tpu.vector_store %arg4[%c0_15, %c0_16, %c0_17], %21 {strides = array<i32>} : memref<1x8x8xf32, #tpu.memory_space<vmem>>, vector<1x8x8xf32>,
    } else {
    }
    return
  }
  func.func @transform_0(%arg0: i32, %arg1: i32, %arg2: i32) -> (i32, i32, i32) {
    %c1_i32 = arith.constant 1 : i32
    %0 = arith.muli %arg1, %c1_i32 : i32
    %1 = arith.addi %0, %arg2 : i32
    %c0_i32 = arith.constant 0 : i32
    %2 = arith.minsi %1, %c0_i32 : i32
    %c0_i32_0 = arith.constant 0 : i32
    %c0_i32_1 = arith.constant 0 : i32
    return %arg0, %c0_i32_0, %2 : i32, i32, i32
  }
  func.func @transform_1(%arg0: i32, %arg1: i32, %arg2: i32) -> (i32, i32, i32) {
    %c1_i32 = arith.constant 1 : i32
    %0 = arith.muli %arg0, %c1_i32 : i32
    %1 = arith.addi %0, %arg1 : i32
    %c0_i32 = arith.constant 0 : i32
    %c0_i32_0 = arith.constant 0 : i32
    %c0_i32_1 = arith.constant 0 : i32
    return %1, %c0_i32, %c0_i32_0 : i32, i32, i32
  }
}

</mosaic_0001>

<bundles_post_ra>
// kernel: tpu_custom_call.1
= control target key start
LH: loop header
LB: loop body
LE: loop exit
PB: predicated region body
PF: predicated region fallthrough
CT: control target
= control target key end

     0   :  { %6 = vsyncpa [#allocation3], 0  ;;  %s741_s0 = inlined_call_operand.hbm [shape: f32[2,8,256], index: 0, kind: input, shape index: {}]   ;;  %s742_s1 = inlined_call_operand.hbm [shape: f32[2,8,8], index: 1, kind: output, shape index: {}]  }
   0x1   :  { %8 = vsyncpa [#allocation3 + $0x1], 0 }
   0x2   :  { %9 = vsyncpa [#allocation4], 0 }
   0x3   :  { %11 = vsyncpa [#allocation4 + $0x1], 0  ;;  %s565_s6 = smov 0   ;;  %s567_s7 = smov 0  }
   0x4   :  { %s569_s8 = smov 0   ;;  %s571_s9 = smov 0  }
   0x5   :  { %s573_s10 = smov 0   ;;  %s575_s11 = smov 0  }
   0x6 LB: > { %s360_s12 = sadd.s32 4294967295, %s550_s11   ;;  %s361_s13 = sadd.s32 4294967294, %s550_s11   ;;  %s550_s11 = sphi %s575_s11, %s17_s11   ;;  %s546_s10 = sphi %s573_s10, %s758_s10   ;;  %s542_s9 = sphi %s571_s9, %s757_s9   ;;  %s538_s8 = sphi %s569_s8, %s756_s8   ;;  %s534_s7 = sphi %s567_s7, %s755_s7   ;;  %s530_s6 = sphi %s565_s6, %s754_s6  }
   0x7   : > { %s36_s14 = sadd.s32 1, %s546_s10  ;;  %s51_s15 = sadd.s32 1, %s538_s8 }
   0x8   : > { %p38_p0 = scmp.ge.s32.totalorder %s36_s14, 2  ;;  %p58_p1 = scmp.ne.s32.totalorder %s538_s8, %s534_s7 }
   0x9   : > { %p59_p2 = scmp.eq.s32.totalorder %s550_s11, 0  ;;  %p64_p3 = scmp.ne.s32.totalorder %s534_s7, %s530_s6 }
   0xa   : > { %s760_s14 = smov (%p38_p0, %s36_s14), 0  ;;  %p65_p5 = scmp.eq.s32.totalorder %s360_s12, 0 }
   0xb   : > { %p606_p4 = por %p59_p2, %p58_p1  ;;  %s46_s17 = ssub.s32 %s546_s10, %s760_s14 }
   0xc   : > { %p90_p6 = scmp.eq.s32.totalorder %s360_s12, 1  ;;  %p49_p7 = scmp.eq.s32.totalorder %s46_s17, 0 }
   0xd   : > { %p612_p8 = por %p65_p5, %p64_p3  ;;  %p96_p10 = scmp.eq.s32.totalorder %s361_s13, 1 }
   0xe   : > { %p616_p9 = por %p90_p6, %p58_p1  ;;  %p387_p13 = scmp.lt.s32.totalorder %s550_s11, 2 }
   0xf   : > { %s621_s20 = scalar_select %p49_p7, %s538_s8, %s51_s15  }
  0x10   : > { %s746_s19 = scalar_select %p616_p9, 1, 0 }
  0x11   : > { %p623_p11 = por %p96_p10, %p64_p3  ;;  %s116_s22 = sand.u32 1, %s538_s8  }
  0x12   : > { %s364_s23 = sshll.u32 %s116_s22, 4  ;;  %s374_s24 = sshll.u32 %s546_s10, 8 }
  0x13   : > { %s747_s21 = scalar_select %p623_p11, 1, 0 }
  0x14   : > { %s634_s27 = scalar_lea.hbm %s741_s0, %s374_s24  ;;  %s120_s28 = scalar_lea.vmem [#allocation2], %s364_s23 }
  0x15   : > { %s133_s29 = sshll.u32 %s120_s28, 4  ;;  %p640_p0 = pnand %p387_p13, %p606_p4  ;;  %s636_s29 = int_to_ptr.vmem [resolvable:$true] %s133_s29 }
  0x16   : > { %s117_s2 = scalar_lea.sflag [#allocation3], %s116_s22  ;;  %s438_s3 = scalar_lea.hbm %s634_s27, 256 }
  0x17   : > { %p439_p3 = scmp.ne.s32.totalorder %s634_s27, %s438_s3  ;;  %p440_p5 = pneg %p640_p0 }
  0x18   : > { %s443_s12 = scalar_lea.hbm %s741_s0, 512  ;;  %p444_p4 = scmp.lt.u32.totalorder %s634_s27, %s741_s0 }
  0x19   : > { %p441_p6 = pnand %p440_p5, %p439_p3  ;;  %p445_p10 = scmp.lt.u32.totalorder %s443_s12, %s438_s3 }
  0x1a   : > { %p447_p12 = scmp.lt.u32.totalorder %s438_s3, %s634_s27 }
  0x1b   : > { %p442_p7 = pneg %p441_p6  ;;  %p446_p13 = por %p445_p10, %p444_p4 }
  0x1d   : > { %p448_p1 = por %p447_p12, %p446_p13 }
  0x1f   : > { %p449_p2 = pnand %p448_p1, %p442_p7 }
  0x21   : > { %452 = shalt.err (!%p449_p2)
}
  0x22   : > { %s453_s16 = scalar_lea.vmem %s636_s29, 256  ;;  %s552_s17 = smov [#allocation2]  }
  0x23   : > { %p454_p3 = scmp.ne.s32.totalorder %s636_s29, %s453_s16  ;;  %s458_s22 = sshll.u32 %s552_s17, 4  ;;  %s459_s22 = int_to_ptr.vmem [resolvable:$false] %s458_s22 }
  0x24   : > { %s460_s23 = scalar_lea.vmem %s459_s22, 512  ;;  %p461_p9 = scmp.lt.s32.totalorder %s636_s29, %s459_s22 }
  0x25   : > { %p456_p6 = pnand %p454_p3, %p440_p5  ;;  %p462_p4 = scmp.lt.s32.totalorder %s460_s23, %s453_s16 }
  0x27   : > { %p457_p11 = pneg %p456_p6  ;;  %p463_p10 = por %p462_p4, %p461_p9 }
  0x29   : > { %p464_p12 = pnand %p463_p10, %p457_p11 }
  0x2b   : > { %467 = shalt.err (!%p464_p12)
}
  0x2c   : > { %382 = dma.hbm_to_vmem [thread:$0]  (!%p640_p0), %s634_s27, 256, %s636_s29, %s117_s2  }
  0x2d   : > { %p749_p1 = scmp.lt.s32.totalorder %s550_s11, 3  ;;  %p750_p2 = scmp.ge.s32.totalorder %s550_s11, 1 }
  0x2f   : > { %p139_p5 = pnand %p750_p2, %p749_p1 }
  0x30   : > { %s676_s24 = sand.u32 (!%p139_p5), 1, %s534_s7  }
  0x31   : > { %142 = sbr.rel (%p139_p5) target bundleno = 300 (0x12c), region = 24  ;;  %s368_s25 = sshll.u32 (!%p139_p5), %s676_s24, 4 }
  0x32   : > { %s145_s26 = scalar_lea.sflag (!%p139_p5), [#allocation3], %s676_s24  ;;  %s148_s28 = scalar_lea.vmem (!%p139_p5), [#allocation2], %s368_s25 }
  0x38   : > { %521 = dma.done.wait (%p612_p8), %s145_s26, 256  }
  0x39   : > { %523 = vsyncadd (%p612_p8), %s145_s26, 4294967040  ;;  %s369_s27 = sshll.u32 %s676_s24, 3  ;;  %vm176_vm0 = vcmask 64512   ;;  %v553_v0 = vmov 0.0   ;;  %v179_v1 = vld [vmem:[%s148_s28 + $0x8] sm:$0xff]  ;;  %v178_v2 = vld [vmem:[%s148_s28] sm:$0xff] }
  0x3a   : > { %s166_s29 = scalar_lea.vmem [#allocation5], %s369_s27  ;;  %181 = vmatprep.subr.mxu0 %v179_v1  ;;  %245 = vmatprep.mubr.f32.mxu0 %v179_v1  ;;  %s371_s18 = sshll.u32 %s542_s9, 7 }
  0x3b   : > { %177 = vst.msk [vmem:[%s166_s29] sm:$0xff] %vm176_vm0, %v553_v0  ;;  %182 = vmatpush1.xpose.msra.mxu0 %v178_v2  ;;  %s275_s30 = sshll.u32 %s166_s29, 4  ;;  %s691_s4 = scalar_lea.hbm %s742_s1, %s371_s18  ;;  %s693_s30 = int_to_ptr.vmem [resolvable:$true] %s275_s30 }
  0x3c   : > { %s261_s5 = scalar_lea.sflag [#allocation4], %s676_s24  ;;  %s468_s12 = scalar_lea.vmem %s693_s30, 128 }
  0x3d   : > { %p469_p8 = scmp.ne.s32.totalorder %s693_s30, %s468_s12  ;;  %p751_p9 = scmp.ne.s32.totalorder %s746_s19, 0 }
  0x3e   : > { %246 = vmatmul.mubr.f32.vlgmr.msra.gmra.mrb[0].mxu0 %v178_v2  ;;  %s554_s9 = smov [#allocation5]  }
  0x3f   : > { %p470_p11 = pnand %p469_p8, %p751_p9  ;;  %s472_s13 = sshll.u32 %s554_s9, 4  ;;  %s473_s13 = int_to_ptr.vmem [resolvable:$false] %s472_s13 }
  0x40   : > { %s474_s15 = scalar_lea.vmem %s473_s13, 256  ;;  %p475_p7 = scmp.lt.s32.totalorder %s693_s30, %s473_s13 }
  0x41   : > { %p471_p0 = pneg %p470_p11  ;;  %p476_p13 = scmp.lt.s32.totalorder %s474_s15, %s468_s12 }
  0x42   : > { %v180_v3 = vld [vmem:[%s166_s29] sm:$0xff] }
  0x43   : > { %p477_p3 = por %p476_p13, %p475_p7 }
  0x45   : > { %p478_p6 = pnand %p477_p3, %p471_p0 }
 0x111   : > { %v247_v4 = vpop.f32.mrb[0].mxu0 }
 0x112   : > { %v251_v5 = vadd.f32 %v247_v4, %v180_v3  ;;  %v249_v6 = vpop.f32.mrb[1].mxu0 }
 0x114   : > { %253 = vst.msk [vmem:[%s166_s29] sm:$0xff] %vm176_vm0, %v251_v5 }
 0x11b   : > { %v257_v7 = vld [vmem:[%s166_s29] sm:$0xff] }
 0x11c   : > { %v258_v8 = vmul.f32 0.0009765625, %v257_v7 }
 0x11e   : > { %259 = vst.msk [vmem:[%s166_s29] sm:$0xff] %vm176_vm0, %v258_v8 }
 0x11f   : > { %481 = shalt.err (!%p478_p6)
}
 0x120   : > { %s482_s16 = scalar_lea.hbm %s691_s4, 128  ;;  %s486_s23 = scalar_lea.hbm %s742_s1, 256 }
 0x121   : > { %p483_p4 = scmp.ne.s32.totalorder %s691_s4, %s482_s16  ;;  %p487_p1 = scmp.lt.u32.totalorder %s691_s4, %s742_s1 }
 0x122   : > { %p488_p2 = scmp.lt.u32.totalorder %s486_s23, %s482_s16  ;;  %p490_p8 = scmp.lt.u32.totalorder %s482_s16, %s691_s4 }
 0x123   : > { %p484_p10 = pnand %p483_p4, %p751_p9 }
 0x124   : > { %p489_p5 = por %p488_p2, %p487_p1 }
 0x125   : > { %p485_p12 = pneg %p484_p10 }
 0x126   : > { %p491_p11 = por %p490_p8, %p489_p5 }
 0x128   : > { %p492_p0 = pnand %p491_p11, %p485_p12 }
 0x12a   : > { %495 = shalt.err (!%p492_p0)
}
 0x12b   : > { %377 = dma.vmem_to_hbm [thread:$0]  (%p751_p9), %s693_s30, 128, %s691_s4, %s261_s5  }
 0x12c PF: > { %s287_s26 = sand.u32 1, %s530_s6   ;;  %p752_p7 = scmp.ne.s32.totalorder %s747_s21, 0 }
 0x12d   : > { %p753_p13 = scmp.ge.s32.totalorder %s550_s11, 2  ;;  %s288_s28 = scalar_lea.sflag [#allocation4], %s287_s26 }
 0x12f   : > { %p384_p3 = pnand %p753_p13, %p752_p7 }
 0x131   : > { %525 = dma.done.wait (!%p384_p3), %s288_s28, 128  }
 0x132   : > { %527 = vsyncadd (!%p384_p3), %s288_s28, 4294967168  ;;  %s17_s11 = sadd.s32 1, %s550_s11   ;;  %s754_s6 = smov %s534_s7 }
 0x133   : > { %p14_p6 = scmp.ge.s32.totalorder %s17_s11, 4   ;;  %s755_s7 = smov %s538_s8 }
 0x134   : > { %s756_s8 = smov %s621_s20  ;;  %s757_s9 = smov %s546_s10 }
 0x135   : > { %s758_s10 = smov %s760_s14  ;;  %16 = sbr.rel (!%p14_p6) target bundleno = 6 (0x6), region = 77 }
 0x13c   :  { %293 = vsyncpa [#allocation3], 1 }
 0x13d   :  { %295 = vsyncpa [#allocation3 + $0x1], 1 }
 0x13e   :  { %296 = vsyncpa [#allocation4], 1 }
 0x13f   :  { %298 = vsyncpa [#allocation4 + $0x1], 1 }

</bundles_post_ra>
